<compile_context>
chip_gen: v5e
topology: v5e:2x2
jax: 0.10.0
libtpu: 0.0.40
codegen_flags: <defaults>
</compile_context>

<pallas_src>
import jax
import jax.numpy as jnp
from jax.experimental import pallas as pl
from jax.experimental.pallas import tpu as pltpu


def _round_up(v, m):
    return (v + m - 1) // m * m


# ---------------------------------------------------------------------------
# Kernels
# ---------------------------------------------------------------------------
def _expert_resident_kernel(x_ref, w1_ref, b1_ref, w2_ref, b2_ref, o_ref):
    """Fast path: both weight matrices resident in VMEM, rows-only grid."""
    h = jnp.dot(x_ref[...], w1_ref[...], preferred_element_type=jnp.float32)
    h = jnp.maximum(h + b1_ref[...], 0.0)
    out = jnp.dot(h.astype(w2_ref.dtype), w2_ref[...],
                  preferred_element_type=jnp.float32)
    o_ref[...] = (out + b2_ref[...]).astype(o_ref.dtype)


def _expert_stream_kernel_f32out(x_ref, w1_ref, b1_ref, w2_ref, b2_ref, o_ref):
    """Hidden dim streamed block-by-block; f32 output doubles as accumulator."""
    k = pl.program_id(1)

    @pl.when(k == 0)
    def _():
        o_ref[...] = jnp.broadcast_to(b2_ref[...], o_ref.shape)

    h = jnp.dot(x_ref[...], w1_ref[...], preferred_element_type=jnp.float32)
    h = jnp.maximum(h + b1_ref[...], 0.0)
    o_ref[...] += jnp.dot(h.astype(w2_ref.dtype), w2_ref[...],
                          preferred_element_type=jnp.float32)


def _expert_stream_kernel(x_ref, w1_ref, b1_ref, w2_ref, b2_ref, o_ref, acc_ref):
    """Streamed hidden dim with an f32 scratch accumulator (non-f32 output)."""
    k = pl.program_id(1)

    @pl.when(k == 0)
    def _():
        acc_ref[...] = jnp.broadcast_to(b2_ref[...], acc_ref.shape)

    h = jnp.dot(x_ref[...], w1_ref[...], preferred_element_type=jnp.float32)
    h = jnp.maximum(h + b1_ref[...], 0.0)
    acc_ref[...] += jnp.dot(h.astype(w2_ref.dtype), w2_ref[...],
                            preferred_element_type=jnp.float32)

    @pl.when(k == pl.num_programs(1) - 1)
    def _():
        o_ref[...] = acc_ref[...].astype(o_ref.dtype)


# ---------------------------------------------------------------------------
# Parameter preparation (done once, not per call)
# ---------------------------------------------------------------------------
def prepare_expert_params(w1, b1, w2, b2, compute_dtype=jnp.bfloat16):
    """Zero-pad feature dims to 128-multiples and cast weights to the MXU dtype."""
    D_in, D_hid = w1.shape
    d_in_p = _round_up(D_in, 128)
    d_hid_p = _round_up(D_hid, 128)

    def pad2(a, rows, cols, dtype):
        if a.shape == (rows, cols) and a.dtype == jnp.dtype(dtype):
            return a
        return (jnp.zeros((rows, cols), dtype)
                .at[:a.shape[0], :a.shape[1]].set(a.astype(dtype)))

    return dict(
        w1=pad2(w1, d_in_p, d_hid_p, compute_dtype),
        w2=pad2(w2, d_hid_p, d_in_p, compute_dtype),
        b1=pad2(b1.reshape(1, -1), 1, d_hid_p, jnp.float32),
        b2=pad2(b2.reshape(1, -1), 1, d_in_p, jnp.float32),
        d_in=D_in, d_hid=D_hid, d_in_p=d_in_p, d_hid_p=d_hid_p,
        compute_dtype=jnp.dtype(compute_dtype),
    )


def _vmem_capacity_bytes():
    try:
        return int(pltpu.get_tpu_info().vmem_capacity_bytes)
    except Exception:
        return 64 * 1024 * 1024     # conservative fallback (v7x per-TC VMEM)


def _choose_tiles(N, d_in_p, d_hid_p, csz, osz, out_is_f32,
                  row_tile_hint=None, k_tile_hint=None):
    """Derive (row_tile, k_tile, use_fast, vmem_limit) from the VMEM budget."""
    vmem_cap = _vmem_capacity_bytes()
    budget = int(vmem_cap * 0.85)
    row_align = max(8, 32 // csz)          # 8 for f32, 16 for bf16, 32 for int8

    if row_tile_hint is not None:
        row_tile = _round_up(row_tile_hint, row_align)
    elif N >= 2 * row_align:
        # >=2 row tiles whenever possible so the parallel axis shards across
        # v7x's two TensorCores; cap at 512 rows for DMA / roofline efficiency.
        row_tile = min(512, _round_up(-(-N // 2), row_align))
    else:
        row_tile = _round_up(max(N, 1), row_align)

    # k-tile candidates: 128-multiples that divide the (128-padded) hidden dim,
    # so no extra zero-padding of W1/W2 is ever needed.
    m = d_hid_p // 128
    k_candidates = [128 * d for d in range(m, 0, -1) if m % d == 0]
    if k_tile_hint is not None:
        cap = max(128, _round_up(k_tile_hint, 128))
        k_candidates = [c for c in k_candidates if c <= cap] or [128]

    def stream_resident(rt, kt):
        return (2 * rt * d_in_p * csz          # x tile (double-buffered)
                + 2 * d_in_p * kt * csz        # W1 column block
                + 2 * kt * d_in_p * csz        # W2 row block
                + 2 * 8 * kt * 4               # b1 chunk (sublane-padded)
                + 2 * 8 * d_in_p * 4           # b2
                + 2 * rt * d_in_p * osz        # out tile
                + rt * kt * 4                  # relu(h) f32 temporary
                + (0 if out_is_f32 else rt * d_in_p * 4))   # acc scratch

    chosen = None
    rt = row_tile
    while chosen is None:
        for kt in k_candidates:
            if stream_resident(rt, kt) <= budget:
                chosen = (rt, kt)
                break
        if chosen is None:
            if rt <= row_align:
                chosen = (rt, k_candidates[-1])   # best effort
            else:
                rt = max(row_align, _round_up(rt // 2, row_align))
    row_tile, k_tile = chosen

    # Fast path: entire weight set resident in VMEM, rows-only grid.
    fast_resident = (2 * row_tile * d_in_p * csz
                     + 2 * row_tile * d_in_p * osz
                     + 2 * d_in_p * d_hid_p * csz
                     + 2 * d_hid_p * d_in_p * csz
                     + 2 * 8 * d_hid_p * 4 + 2 * 8 * d_in_p * 4
                     + row_tile * d_hid_p * 4)
    if k_tile_hint is not None and k_tile < d_hid_p:
        use_fast = False                            # caller forced streaming
    else:
        use_fast = (k_tile == d_hid_p) or (fast_resident <= budget)

    resident = fast_resident if use_fast else stream_resident(row_tile, k_tile)
    vmem_limit = int(min(vmem_cap, max(resident + (8 << 20), 32 << 20)))
    return row_tile, k_tile, use_fast, vmem_limit


# ---------------------------------------------------------------------------
# Launcher
# ---------------------------------------------------------------------------
def _expert_call(x, params, *, row_tile=None, k_tile=None):
    N, D_in = x.shape
    assert D_in == params["d_in"], "input feature dim mismatch"
    d_in_p, d_hid_p = params["d_in_p"], params["d_hid_p"]
    cdtype = params["compute_dtype"]
    out_dtype = x.dtype
    out_is_f32 = out_dtype == jnp.float32

    csz = jnp.dtype(cdtype).itemsize
    osz = jnp.dtype(out_dtype).itemsize

    rt, kt, use_fast, vmem_limit = _choose_tiles(
        N, d_in_p, d_hid_p, csz, osz, out_is_f32, row_tile, k_tile)

    n_p = _round_up(max(N, 1), rt)
    # Only the activations are padded/cast per call; weights were prepared once.
    if x.shape == (n_p, d_in_p) and x.dtype == cdtype:
        x_p = x
    else:
        x_p = (jnp.zeros((n_p, d_in_p), cdtype)
               .at[:N, :D_in].set(x.astype(cdtype)))

    w1_p, b1_p = params["w1"], params["b1"]
    w2_p, b2_p = params["w2"], params["b2"]
    n_row = n_p // rt

    cost = pl.CostEstimate(
        flops=4 * n_p * d_in_p * d_hid_p,
        transcendentals=0,
        bytes_accessed=int(x_p.size * csz + n_p * d_in_p * osz
                           + n_row * (w1_p.size + w2_p.size) * csz
                           + b1_p.size * 4 + b2_p.size * 4),
    )
    compiler_params = pltpu.CompilerParams(
        dimension_semantics=("parallel",) if use_fast
        else ("parallel", "arbitrary"),
        vmem_limit_bytes=vmem_limit,
    )

    if use_fast:
        out_p = pl.pallas_call(
            _expert_resident_kernel,
            out_shape=jax.ShapeDtypeStruct((n_p, d_in_p), out_dtype),
            grid_spec=pltpu.PrefetchScalarGridSpec(
                num_scalar_prefetch=0,
                grid=(n_row,),
                in_specs=[
                    pl.BlockSpec((rt, d_in_p), lambda i: (i, 0)),        # x rows
                    pl.BlockSpec((d_in_p, d_hid_p), lambda i: (0, 0)),   # W1 (resident)
                    pl.BlockSpec((1, d_hid_p), lambda i: (0, 0)),        # b1
                    pl.BlockSpec((d_hid_p, d_in_p), lambda i: (0, 0)),   # W2 (resident)
                    pl.BlockSpec((1, d_in_p), lambda i: (0, 0)),         # b2
                ],
                out_specs=pl.BlockSpec((rt, d_in_p), lambda i: (i, 0)),
            ),
            compiler_params=compiler_params,
            cost_estimate=cost,
        )(x_p, w1_p, b1_p, w2_p, b2_p)
    else:
        kernel = _expert_stream_kernel_f32out if out_is_f32 else _expert_stream_kernel
        scratch = [] if out_is_f32 else [pltpu.VMEM((rt, d_in_p), jnp.float32)]
        out_p = pl.pallas_call(
            kernel,
            out_shape=jax.ShapeDtypeStruct((n_p, d_in_p), out_dtype),
            grid_spec=pltpu.PrefetchScalarGridSpec(
                num_scalar_prefetch=0,
                grid=(n_row, d_hid_p // kt),
                in_specs=[
                    pl.BlockSpec((rt, d_in_p), lambda i, k: (i, 0)),   # x rows
                    pl.BlockSpec((d_in_p, kt), lambda i, k: (0, k)),   # W1 col-block
                    pl.BlockSpec((1, kt), lambda i, k: (0, k)),        # b1 chunk
                    pl.BlockSpec((kt, d_in_p), lambda i, k: (k, 0)),   # W2 row-block
                    pl.BlockSpec((1, d_in_p), lambda i, k: (0, 0)),    # b2
                ],
                out_specs=pl.BlockSpec((rt, d_in_p), lambda i, k: (i, 0)),
                scratch_shapes=scratch,
            ),
            compiler_params=compiler_params,
            cost_estimate=cost,
        )(x_p, w1_p, b1_p, w2_p, b2_p)

    return out_p[:N, :D_in]


class PallasExpert:
    """Counterpart of the PyTorch Expert module.

    Weights are padded/cast to the MXU compute dtype once at construction;
    per-call work only pads the activations.
    """

    def __init__(self, w1, b1, w2, b2, *, mxu_dtype=jnp.bfloat16):
        self.params = prepare_expert_params(w1, b1, w2, b2, mxu_dtype)

    def __call__(self, x, *, row_tile=None, k_tile=None):
        return _expert_call(x, self.params, row_tile=row_tile, k_tile=k_tile)


def expert_forward(x, w1, b1, w2, b2, *, mxu_dtype="auto",
                   row_tile=None, k_tile=None):
    """One-shot convenience wrapper (re-prepares weights every call; prefer
    PallasExpert for repeated calls with the same expert)."""
    if mxu_dtype == "auto":
        mxu_dtype = jnp.bfloat16 if x.dtype == jnp.float32 else x.dtype
    params = prepare_expert_params(w1, b1, w2, b2, mxu_dtype)
    return _expert_call(x, params, row_tile=row_tile, k_tile=k_tile)


if __name__ == "__main__":
    def make_inputs(key, n, d_in, d_hid):
        kx, kw1, kb1, kw2, kb2 = jax.random.split(key, 5)
        x = jax.random.normal(kx, (n, d_in), jnp.float32)
        lim1 = 1.0 / (d_in ** 0.5)
        lim2 = 1.0 / (d_hid ** 0.5)
        w1 = jax.random.uniform(kw1, (d_in, d_hid), jnp.float32, -lim1, lim1)
        b1 = jax.random.uniform(kb1, (d_hid,), jnp.float32, -lim1, lim1)
        w2 = jax.random.uniform(kw2, (d_hid, d_in), jnp.float32, -lim2, lim2)
        b2 = jax.random.uniform(kb2, (d_in,), jnp.float32, -lim2, lim2)
        return x, w1, b1, w2, b2

    def ref_fn(x, w1, b1, w2, b2):
        return jnp.maximum(x @ w1 + b1, 0.0) @ w2 + b2

    # 1) Small module-implied shapes, f32 MXU operands -> tight tolerance.
    x, w1, b1, w2, b2 = make_inputs(jax.random.PRNGKey(0), 8, 32, 64)
    out = jax.block_until_ready(
        expert_forward(x, w1, b1, w2, b2, mxu_dtype=jnp.float32))
    ref = ref_fn(x, w1, b1, w2, b2)
    assert out.shape == (8, 32)
    assert jnp.allclose(out, ref, atol=1e-5, rtol=1e-5)

    # 2) Default path: bf16 MXU operands + f32 accumulation via prepared
    #    (pad-once) weights; ragged rows and non-128 feature dim exercise
    #    padding, 2 row tiles exercise the parallel axis.
    x2, w12, b12, w22, b22 = make_inputs(jax.random.PRNGKey(1), 384, 160, 1024)
    expert = PallasExpert(w12, b12, w22, b22)          # pads/casts weights once
    out2 = jax.block_until_ready(expert(x2))
    ref2 = ref_fn(x2, w12, b12, w22, b22)
    assert out2.shape == (384, 160)
    rel_err = float(jnp.max(jnp.abs(out2 - ref2)) /
                    (jnp.max(jnp.abs(ref2)) + 1e-6))
    assert rel_err < 5e-2, rel_err

    # 3) Force the streamed multi-K-step path (f32 operands, b2 folded into the
    #    k==0 init, accumulation directly in the resident output block).
    out3 = jax.block_until_ready(
        expert_forward(x2, w12, b12, w22, b22, mxu_dtype=jnp.float32,
                       row_tile=128, k_tile=512))
    assert out3.shape == (384, 160)
    assert jnp.allclose(out3, ref2, atol=1e-2, rtol=1e-2)

    print("KERNEL_OK")
</pallas_src>

<mosaic_0001>
module attributes {stable_mosaic.version = 11 : i64} {
  func.func @_expert_resident_kernel(%arg0: i32, %arg1: memref<8x128xf32, #tpu.memory_space<vmem>>, %arg2: memref<128x128xf32, #tpu.memory_space<vmem>>, %arg3: memref<1x128xf32, #tpu.memory_space<vmem>>, %arg4: memref<128x128xf32, #tpu.memory_space<vmem>>, %arg5: memref<1x128xf32, #tpu.memory_space<vmem>>, %arg6: memref<8x128xf32, #tpu.memory_space<vmem>>) attributes {dimension_semantics = [#tpu.dimension_semantics<parallel>], iteration_bounds = array<i64: 1>, scalar_prefetch = 0 : i64, scratch_operands = 0 : i64, tpu.core_type = #tpu.core_type<tc>, window_params = [{transform_indices = @transform_0, window_bounds = array<i64: 8, 128>}, {pipeline_mode = #tpu.pipeline_mode<synchronous>, transform_indices = @transform_1, window_bounds = array<i64: 128, 128>}, {pipeline_mode = #tpu.pipeline_mode<synchronous>, transform_indices = @transform_2, window_bounds = array<i64: 1, 128>}, {pipeline_mode = #tpu.pipeline_mode<synchronous>, transform_indices = @transform_3, window_bounds = array<i64: 128, 128>}, {pipeline_mode = #tpu.pipeline_mode<synchronous>, transform_indices = @transform_4, window_bounds = array<i64: 1, 128>}, {transform_indices = @transform_5, window_bounds = array<i64: 8, 128>}]} {
    %c0 = arith.constant 0 : index
    %c0_0 = arith.constant 0 : index
    %0 = vector.load %arg1[%c0, %c0_0] : memref<8x128xf32, #tpu.memory_space<vmem>>, vector<8x128xf32>
    %c0_1 = arith.constant 0 : index
    %c0_2 = arith.constant 0 : index
    %1 = vector.load %arg2[%c0_1, %c0_2] : memref<128x128xf32, #tpu.memory_space<vmem>>, vector<128x128xf32>
    %cst = arith.constant dense<0.000000e+00> : vector<8x128xf32>
    %2 = tpu.matmul %0, %1, %cst {dimension_numbers = #tpu.dot_dimension_numbers<[1], [0], [0], [1], [0, 0, 1, 1], [], []>} : vector<8x128xf32>, vector<128x128xf32>, vector<8x128xf32> -> vector<8x128xf32>
    %c0_3 = arith.constant 0 : index
    %c0_4 = arith.constant 0 : index
    %3 = vector.load %arg3[%c0_3, %c0_4] : memref<1x128xf32, #tpu.memory_space<vmem>>, vector<1x128xf32>
    %4 = vector.broadcast %3 : vector<1x128xf32> to vector<8x128xf32>
    %5 = arith.addf %2, %4 : vector<8x128xf32>
    %cst_5 = arith.constant 0.000000e+00 : f32
    %6 = vector.broadcast %cst_5 : f32 to vector<8x128xf32>
    %7 = arith.maximumf %5, %6 : vector<8x128xf32>
    %c0_6 = arith.constant 0 : index
    %c0_7 = arith.constant 0 : index
    %8 = vector.load %arg4[%c0_6, %c0_7] : memref<128x128xf32, #tpu.memory_space<vmem>>, vector<128x128xf32>
    %cst_8 = arith.constant dense<0.000000e+00> : vector<8x128xf32>
    %9 = tpu.matmul %7, %8, %cst_8 {dimension_numbers = #tpu.dot_dimension_numbers<[1], [0], [0], [1], [0, 0, 1, 1], [], []>} : vector<8x128xf32>, vector<128x128xf32>, vector<8x128xf32> -> vector<8x128xf32>
    %c0_9 = arith.constant 0 : index
    %c0_10 = arith.constant 0 : index
    %10 = vector.load %arg5[%c0_9, %c0_10] : memref<1x128xf32, #tpu.memory_space<vmem>>, vector<1x128xf32>
    %11 = vector.broadcast %10 : vector<1x128xf32> to vector<8x128xf32>
    %12 = arith.addf %9, %11 : vector<8x128xf32>
    %c0_11 = arith.constant 0 : index
    %c0_12 = arith.constant 0 : index
    %13 = vector.load %arg6[%c0_11, %c0_12] : memref<8x128xf32, #tpu.memory_space<vmem>>, vector<8x128xf32>
    tpu.vector_store %arg6[%c0_11, %c0_12], %12 {strides = array<i32>} : memref<8x128xf32, #tpu.memory_space<vmem>>, vector<8x128xf32>,
    return
  }
  func.func @transform_0(%arg0: i32) -> (i32, i32) {
    %c0_i32 = arith.constant 0 : i32
    %c0_i32_0 = arith.constant 0 : i32
    return %arg0, %c0_i32 : i32, i32
  }
  func.func @transform_1(%arg0: i32) -> (i32, i32) {
    %c0_i32 = arith.constant 0 : i32
    %c0_i32_0 = arith.constant 0 : i32
    %c0_i32_1 = arith.constant 0 : i32
    return %c0_i32, %c0_i32_0 : i32, i32
  }
  func.func @transform_2(%arg0: i32) -> (i32, i32) {
    %c0_i32 = arith.constant 0 : i32
    %c0_i32_0 = arith.constant 0 : i32
    %c0_i32_1 = arith.constant 0 : i32
    return %c0_i32, %c0_i32_0 : i32, i32
  }
  func.func @transform_3(%arg0: i32) -> (i32, i32) {
    %c0_i32 = arith.constant 0 : i32
    %c0_i32_0 = arith.constant 0 : i32
    %c0_i32_1 = arith.constant 0 : i32
    return %c0_i32, %c0_i32_0 : i32, i32
  }
  func.func @transform_4(%arg0: i32) -> (i32, i32) {
    %c0_i32 = arith.constant 0 : i32
    %c0_i32_0 = arith.constant 0 : i32
    %c0_i32_1 = arith.constant 0 : i32
    return %c0_i32, %c0_i32_0 : i32, i32
  }
  func.func @transform_5(%arg0: i32) -> (i32, i32) {
    %c0_i32 = arith.constant 0 : i32
    %c0_i32_0 = arith.constant 0 : i32
    return %arg0, %c0_i32 : i32, i32
  }
}

</mosaic_0001>

<bundles_post_ra>
// kernel: tpu_custom_call.1
= control target key start
LH: loop header
LB: loop body
LE: loop exit
PB: predicated region body
PF: predicated region fallthrough
CT: control target
= control target key end

     0   :  { %10 = vsyncpa [#allocation3], 0  ;;  %s331_s0 = inlined_call_operand.hbm [shape: f32[8,128], index: 0, kind: input, shape index: {}]   ;;  %s332_s1 = inlined_call_operand.hbm [shape: f32[128,128], index: 1, kind: input, shape index: {}]   ;;  %s333_s2 = inlined_call_operand.vmem [shape: f32[1,128], index: 2, kind: input, shape index: {}]   ;;  %s334_s3 = inlined_call_operand.hbm [shape: f32[128,128], index: 3, kind: input, shape index: {}]   ;;  %s335_s4 = inlined_call_operand.vmem [shape: f32[1,128], index: 4, kind: input, shape index: {}]   ;;  %s336_s5 = inlined_call_operand.hbm [shape: f32[8,128], index: 5, kind: output, shape index: {}]  }
   0x1   :  { %11 = vsyncpa [#allocation6], 0  ;;  %s28_s20 = sshll.u32 %s332_s1, 4  ;;  %s29_s20 = int_to_ptr.hbm [resolvable:$true] %s28_s20 }
   0x2   :  { %12 = vsyncpa [#allocation4], 0  ;;  %s277_s21 = smov [#allocation5]   ;;  %s18_s25 = sshll.u32 %s331_s0, 4  ;;  %s19_s25 = int_to_ptr.hbm [resolvable:$true] %s18_s25 }
   0x3   :  { %s30_s22 = sshll.u32 %s277_s21, 4  ;;  %s278_s26 = smov 128   ;;  %s31_s22 = int_to_ptr.vmem [resolvable:$true] %s30_s22 }
   0x4   :  { %s279_s27 = smov 8   ;;  %s280_s28 = smov [#allocation2]  }
   0x5   :  { %36 = dma.hbm_to_vmem [thread:$0]  %s29_s20, 2048, %s31_s22, [#allocation6], %s278_s26, %s278_s26, %s279_s27  }
   0x6   :  { %s20_s29 = sshll.u32 %s280_s28, 4  ;;  %s43_s7 = sshll.u32 %s334_s3, 4  ;;  %s21_s29 = int_to_ptr.vmem [resolvable:$true] %s20_s29  ;;  %s44_s7 = int_to_ptr.hbm [resolvable:$true] %s43_s7 }
   0x7   :  { %23 = dma.hbm_to_vmem [thread:$0]  %s19_s25, 128, %s21_s29, [#allocation3]  }
   0x8   :  { %s281_s1 = smov [#allocation7]  }
   0x9   :  { %s45_s8 = sshll.u32 %s281_s1, 4  ;;  %s46_s8 = int_to_ptr.vmem [resolvable:$true] %s45_s8 }
   0xa   :  { %51 = dma.hbm_to_vmem [thread:$0]  %s44_s7, 2048, %s46_s8, [#allocation6], %s278_s26, %s278_s26, %s279_s27  }
   0xb   :  { %271 = dma.done.wait [#allocation3], 128  }
   0xc   :  { %272 = vsyncadd [#allocation3], 4294967168 }
   0xd   :  { %273 = dma.done.wait [#allocation6], 4096  }
   0xe   :  { %274 = vsyncadd [#allocation6], 4294963200  ;;  %v82_v0 = vld [vmem:[#allocation5 + $0x78] sm:$0xff]  ;;  %v81_v1 = vld [vmem:[#allocation5 + $0x70] sm:$0xff]  ;;  %s282_s11 = smov [#allocation8]   ;;  %s156_s15 = sshll.u32 %s336_s5, 4  ;;  %s157_s15 = int_to_ptr.hbm [resolvable:$true] %s156_s15 }
   0xf   :  { %87 = vmatpush.msra.mxu0 %v82_v0  ;;  %v80_v2 = vld [vmem:[#allocation5 + $0x68] sm:$0xff]  ;;  %v79_v3 = vld [vmem:[#allocation5 + $0x60] sm:$0xff]  ;;  %v123_v4 = vld [vmem:[#allocation7 + $0x78] sm:$0xff]  ;;  %s154_s12 = sshll.u32 %s282_s11, 4  ;;  %s155_s12 = int_to_ptr.vmem [resolvable:$true] %s154_s12 }
  0x10   :  { %v78_v5 = vld [vmem:[#allocation5 + $0x58] sm:$0xff]  ;;  %128 = vmatpush.msra.mxu1 %v123_v4  ;;  %v122_v6 = vld [vmem:[#allocation7 + $0x70] sm:$0xff]  ;;  %v121_v7 = vld [vmem:[#allocation7 + $0x68] sm:$0xff] }
  0x11   :  { %88 = vmatpush.msra.mxu0 %v81_v1  ;;  %v77_v8 = vld [vmem:[#allocation5 + $0x50] sm:$0xff]  ;;  %v120_v9 = vld [vmem:[#allocation7 + $0x60] sm:$0xff]  ;;  %v76_v10 = vld [vmem:[#allocation5 + $0x48] sm:$0xff] }
  0x12   :  { %129 = vmatpush.msra.mxu1 %v122_v6  ;;  %v119_v11 = vld [vmem:[#allocation7 + $0x58] sm:$0xff]  ;;  %v75_v12 = vld [vmem:[#allocation5 + $0x40] sm:$0xff]  ;;  %v118_v13 = vld [vmem:[#allocation7 + $0x50] sm:$0xff] }
  0x13   :  { %89 = vmatpush.msra.mxu0 %v80_v2  ;;  %v74_v14 = vld [vmem:[#allocation5 + $0x38] sm:$0xff]  ;;  %v117_v15 = vld [vmem:[#allocation7 + $0x48] sm:$0xff]  ;;  %v73_v16 = vld [vmem:[#allocation5 + $0x30] sm:$0xff] }
  0x14   :  { %130 = vmatpush.msra.mxu1 %v121_v7  ;;  %v116_v17 = vld [vmem:[#allocation7 + $0x40] sm:$0xff]  ;;  %v72_v18 = vld [vmem:[#allocation5 + $0x28] sm:$0xff]  ;;  %v115_v19 = vld [vmem:[#allocation7 + $0x38] sm:$0xff] }
  0x15   :  { %90 = vmatpush.msra.mxu0 %v79_v3  ;;  %v71_v20 = vld [vmem:[#allocation5 + $0x20] sm:$0xff]  ;;  %v114_v21 = vld [vmem:[#allocation7 + $0x30] sm:$0xff]  ;;  %v70_v22 = vld [vmem:[#allocation5 + $0x18] sm:$0xff] }
  0x16   :  { %131 = vmatpush.msra.mxu1 %v120_v9  ;;  %v113_v23 = vld [vmem:[#allocation7 + $0x28] sm:$0xff]  ;;  %v69_v24 = vld [vmem:[#allocation5 + $0x10] sm:$0xff]  ;;  %v112_v25 = vld [vmem:[#allocation7 + $0x20] sm:$0xff] }
  0x17   :  { %91 = vmatpush.msra.mxu0 %v78_v5  ;;  %v68_v26 = vld [vmem:[#allocation5 + $0x8] sm:$0xff]  ;;  %v111_v27 = vld [vmem:[#allocation7 + $0x18] sm:$0xff]  ;;  %v67_v28 = vld [vmem:[#allocation5] sm:$0xff] }
  0x18   :  { %132 = vmatpush.msra.mxu1 %v119_v11  ;;  %v66_v29 = vld [vmem:[#allocation2] sm:$0xff]  ;;  %v110_v30 = vld [vmem:[#allocation7 + $0x10] sm:$0xff]  ;;  %v109_v31 = vld [vmem:[#allocation7 + $0x8] sm:$0xff] }
  0x19   :  { %92 = vmatpush.msra.mxu0 %v77_v8  ;;  %v108_v32 = vld [vmem:[#allocation7] sm:$0xff]  ;;  %v173_v33 = vld [vmem:[%s333_s2] ss:$0 sm:$0xff] }
  0x1a   :  { %133 = vmatpush.msra.mxu1 %v118_v13  ;;  %v174_v37 = vld [vmem:[%s335_s4] ss:$0 sm:$0xff] }
  0x1b   :  { %93 = vmatpush.msra.mxu0 %v76_v10 }
  0x1c   :  { %134 = vmatpush.msra.mxu1 %v117_v15 }
  0x1d   :  { %94 = vmatpush.msra.mxu0 %v75_v12 }
  0x1e   :  { %135 = vmatpush.msra.mxu1 %v116_v17 }
  0x1f   :  { %95 = vmatpush.msra.mxu0 %v74_v14 }
  0x20   :  { %136 = vmatpush.msra.mxu1 %v115_v19 }
  0x21   :  { %96 = vmatpush.msra.mxu0 %v73_v16 }
  0x22   :  { %137 = vmatpush.msra.mxu1 %v114_v21 }
  0x23   :  { %97 = vmatpush.msra.mxu0 %v72_v18 }
  0x24   :  { %138 = vmatpush.msra.mxu1 %v113_v23 }
  0x25   :  { %98 = vmatpush.msra.mxu0 %v71_v20 }
  0x26   :  { %139 = vmatpush.msra.mxu1 %v112_v25 }
  0x27   :  { %99 = vmatpush.msra.mxu0 %v70_v22 }
  0x28   :  { %140 = vmatpush.msra.mxu1 %v111_v27 }
  0x29   :  { %100 = vmatpush.msra.mxu0 %v69_v24 }
  0x2a   :  { %141 = vmatpush.msra.mxu1 %v110_v30 }
  0x2b   :  { %101 = vmatpush.msra.mxu0 %v68_v26 }
  0x2c   :  { %142 = vmatpush.msra.mxu1 %v109_v31 }
  0x2d   :  { %102 = vmatpush.msra.mxu0 %v67_v28 }
  0x2e   :  { %103 = vmatmul.f32.vlgmr.msra.gmra.mxu0 %v66_v29  ;;  %143 = vmatpush.msra.mxu1 %v108_v32 }
  0xab   :  { %v104_v34 = vpop.f32.mrf.mxu0 }
  0xac   :  { %v105_v35 = vadd.f32 %v173_v33, %v104_v34 }
  0xae   :  { %v107_v36 = vmax.f32 %v105_v35, 0.0 }
  0xb0   :  { %144 = vmatmul.f32.vlgmr.msra.gmra.mxu1 %v107_v36 }
 0x12d   :  { %v145_v38 = vpop.f32.mrf.mxu1 }
 0x12e   :  { %v146_v39 = vadd.f32 %v174_v37, %v145_v38 }
 0x130   :  { %148 = vst [vmem:[#allocation8] sm:$0xff] %v146_v39 }
 0x131   :  { %159 = dma.vmem_to_hbm [thread:$0]  %s155_s12, 128, %s157_s15, [#allocation4]  }
 0x132   :  { %275 = dma.done.wait [#allocation4], 128  }
 0x133   :  { %276 = vsyncadd [#allocation4], 4294967168 }
 0x134   :  { %164 = vsyncpa [#allocation3], 1 }
 0x135   :  { %165 = vsyncpa [#allocation6], 1 }
 0x136   :  { %166 = vsyncpa [#allocation4], 1 }

</bundles_post_ra>
